<compile_context>
chip_gen: v7x
topology: tpu7x:2x2x1
jax: 0.10.0
libtpu: 0.0.40
codegen_flags: <defaults>
</compile_context>

<pallas_src>
import functools

import jax
import jax.numpy as jnp
from jax import lax
from jax.experimental import pallas as pl
from jax.experimental.pallas import tpu as pltpu


def _round_up(x, m):
    return ((x + m - 1) // m) * m


def _fmix32(x):
    """murmur3 finalizer: uint32 -> well-mixed uint32."""
    x = x ^ (x >> jnp.uint32(16))
    x = x * jnp.uint32(0x85EBCA6B)
    x = x ^ (x >> jnp.uint32(13))
    x = x * jnp.uint32(0xC2B2AE35)
    x = x ^ (x >> jnp.uint32(16))
    return x


def _dropout_multiplier(shape, base_row, seed, dropout_p, dtype):
    """(tm, D) multiplier: 1/(1-p) where kept, 0 where dropped.

    Hash of the *global* (token, dim) index -> the realized mask is invariant
    to the tiling and identical across all gather paths.
    """
    seed_mix = (int(seed) * 0x9E3779B9 + 0x85EBCA6B) & 0xFFFFFFFF
    row = lax.broadcasted_iota(jnp.uint32, shape, 0) + \
        jnp.asarray(base_row).astype(jnp.uint32)
    col = lax.broadcasted_iota(jnp.uint32, shape, 1)
    h = _fmix32(row ^ jnp.uint32(seed_mix))          # per-token hash
    bits = _fmix32(h ^ (col * jnp.uint32(0x9E3779B1)))  # mix in the dim index
    thresh = jnp.uint32(min(int(dropout_p * 4294967296.0), 0xFFFFFFFF))
    scale = jnp.float32(1.0 / (1.0 - dropout_p))
    return jnp.where(bits >= thresh, scale, jnp.float32(0.0)).astype(dtype)


# ----------------------------------------------------------------------------
# Path A1: VMEM-resident table, one-hot MXU gather (small vocab).
# ----------------------------------------------------------------------------
def _onehot_gather_kernel(ids_ref, table_ref, out_ref, *, dropout_p, training,
                          seed):
    # ids_ref:   VMEM (tm, 1) int32
    # table_ref: VMEM (V, D)  (resident: same block every grid step)
    # out_ref:   VMEM (tm, D)
    tm, D = out_ref.shape
    V = table_ref.shape[0]
    ids = ids_ref[...]                                              # (tm, 1)
    onehot = (ids == lax.broadcasted_iota(jnp.int32, (tm, V), 1))
    onehot = onehot.astype(table_ref.dtype)                         # (tm, V)
    # HIGHEST precision keeps the f32 one-hot gather exact (bf16x passes).
    prec = (lax.Precision.HIGHEST
            if jnp.dtype(table_ref.dtype) == jnp.dtype(jnp.float32)
            else lax.Precision.DEFAULT)
    emb = jnp.dot(onehot, table_ref[...], precision=prec,
                  preferred_element_type=jnp.float32)               # (tm, D)
    if training and dropout_p > 0.0:
        base = pl.program_id(0) * tm
        emb = emb * _dropout_multiplier((tm, D), base, seed, dropout_p,
                                        jnp.float32)
    out_ref[...] = emb.astype(out_ref.dtype)


# ----------------------------------------------------------------------------
# Path A2: VMEM-resident table, per-row dynamic-slice gather (medium vocab).
# ----------------------------------------------------------------------------
def _resident_rowgather_kernel(ids_ref, table_ref, out_ref, *, tm, dropout_p,
                               training, seed):
    # ids_ref:   SMEM (N_pad,) int32 (scalar prefetch)
    # table_ref: VMEM (V, D) resident table
    # out_ref:   VMEM (tm, D)
    base = pl.program_id(0) * tm

    @pl.loop(0, tm)
    def _(j):
        tok = ids_ref[base + j]
        out_ref[pl.ds(j, 1), :] = table_ref[pl.ds(tok, 1), :]

    if training and dropout_p > 0.0:
        mult = _dropout_multiplier(out_ref.shape, base, seed, dropout_p,
                                   out_ref.dtype)
        out_ref[...] = out_ref[...] * mult


# ----------------------------------------------------------------------------
# Path B (eval): HBM table, per-row DMA straight into the output block.
# ----------------------------------------------------------------------------
def _hbm_gather_eval_kernel(ids_ref, table_hbm, out_ref, sem, *, tm):
    # ids_ref: SMEM (N_pad,) int32 ; table_hbm: HBM (V, D) ; out_ref: VMEM (tm, D)
    base = pl.program_id(0) * tm

    # Issue all row DMAs on one shared semaphore (SMEM reads happen before any
    # wait), writing directly into the pipelined output block.
    @pl.loop(0, tm)
    def _(j):
        tok = ids_ref[base + j]
        pltpu.make_async_copy(table_hbm.at[pl.ds(tok, 1)],
                              out_ref.at[pl.ds(j, 1)],
                              sem.at[0]).start()

    # All row copies are identically sized: wait once per issued copy.
    @pl.loop(0, tm)
    def _(j):
        pltpu.make_async_copy(table_hbm.at[pl.ds(0, 1)],
                              out_ref.at[pl.ds(0, 1)],
                              sem.at[0]).wait()


# ----------------------------------------------------------------------------
# Path B (training): HBM table, cross-step double-buffered DMA gather.
# ----------------------------------------------------------------------------
def _hbm_gather_train_kernel(ids_ref, table_hbm, out_ref, rows_vmem, sems, *,
                             tm, dropout_p, seed):
    # rows_vmem: VMEM (2, tm, D) double buffer ; sems: DMA semaphores (2,)
    i = pl.program_id(0)
    nb = pl.num_programs(0)
    slot = i & 1

    def issue_tile(tile, s):
        @pl.loop(0, tm)
        def _(j):
            tok = ids_ref[tile * tm + j]
            pltpu.make_async_copy(table_hbm.at[pl.ds(tok, 1)],
                                  rows_vmem.at[s, pl.ds(j, 1)],
                                  sems.at[s]).start()

    @pl.when(i == 0)
    def _():
        issue_tile(0, 0)                       # prime the first tile

    # Prefetch the next tile into the other slot before waiting: its gather
    # overlaps this tile's wait + dropout + output writeback.
    @pl.when(i + 1 < nb)
    def _():
        issue_tile(i + 1, 1 - slot)

    @pl.loop(0, tm)
    def _(j):
        pltpu.make_async_copy(table_hbm.at[pl.ds(0, 1)],
                              rows_vmem.at[slot, pl.ds(0, 1)],
                              sems.at[slot]).wait()

    emb = rows_vmem[slot]                                           # (tm, D)
    base = i * tm
    mult = _dropout_multiplier(emb.shape, base, seed, dropout_p, emb.dtype)
    out_ref[...] = (emb * mult).astype(out_ref.dtype)


# ----------------------------------------------------------------------------
# Wrapper
# ----------------------------------------------------------------------------
def embedding_forward(data, weight, *, dropout_p=0.5, seed=0, tm=256,
                      onehot_vocab_limit=2048,
                      resident_vmem_budget=24 * 1024 * 1024,
                      force_hbm_gather=False):
    """Pallas equivalent of Embedding.forward.

    data:   {"inputs": int[B, S], "training": bool}
    weight: float[vocab_size, embedding_dims] (row padding_idx already zero)
    returns {"out": float[B, S, embedding_dims]}
    """
    ids = jnp.asarray(data["inputs"])
    training = bool(data["training"])
    assert 0.0 <= dropout_p < 1.0, "dropout_p must be in [0, 1)"
    assert ids.ndim == 2 and weight.ndim == 2
    B, S = ids.shape
    V, D = weight.shape
    N = B * S

    # Token tile: large by default (per-step overhead amortization), multiple
    # of 8 (sublane), never bigger than the (rounded) token count.
    tm = max(8, (int(tm) // 8) * 8)
    tm = min(tm, _round_up(N, 8))
    nb = pl.cdiv(N, tm)
    N_pad = nb * tm

    # TODO(synk): nn.Embedding raises on out-of-range ids; here they are clamped.
    ids_flat = jnp.clip(ids.reshape(-1).astype(jnp.int32), 0, V - 1)
    if N_pad != N:
        # Pad with padding_idx (row 0); padded rows are sliced off below.
        ids_flat = jnp.concatenate(
            [ids_flat, jnp.zeros((N_pad - N,), jnp.int32)])

    apply_dropout = training and dropout_p > 0.0
    itemsize = jnp.dtype(weight.dtype).itemsize
    table_bytes = V * D * itemsize
    out_block_bytes = tm * D * itemsize
    # Budget assumes the table and output blocks are double-buffered, + slack.
    resident_need = 2 * table_bytes + 2 * out_block_bytes + (4 << 20)
    use_resident = (not force_hbm_gather) and resident_need <= resident_vmem_budget
    use_onehot = (use_resident and V <= onehot_vocab_limit
                  and tm * V * (itemsize + 4) <= (8 << 20))

    out_shape = jax.ShapeDtypeStruct((N_pad, D), weight.dtype)

    if use_onehot:
        # ---- Path A1: resident table + one-hot MXU gather -----------------
        kernel = functools.partial(_onehot_gather_kernel,
                                   dropout_p=float(dropout_p),
                                   training=training, seed=int(seed))
        out = pl.pallas_call(
            kernel,
            out_shape=out_shape,
            grid=(nb,),
            in_specs=[
                pl.BlockSpec((tm, 1), lambda i: (i, 0)),        # ids tile
                pl.BlockSpec((V, D), lambda i: (0, 0)),         # resident table
            ],
            out_specs=pl.BlockSpec((tm, D), lambda i: (i, 0)),
            compiler_params=pltpu.CompilerParams(
                dimension_semantics=("parallel",),
                vmem_limit_bytes=32 * 1024 * 1024),
        )(ids_flat.reshape(N_pad, 1), weight)
    elif use_resident:
        # ---- Path A2: resident table + per-row dynamic-slice gather -------
        # TODO(synk): ids live in SMEM (scalar prefetch); extremely large B*S
        # would need chunking of the id table.
        kernel = functools.partial(_resident_rowgather_kernel, tm=tm,
                                   dropout_p=float(dropout_p),
                                   training=training, seed=int(seed))
        out = pl.pallas_call(
            kernel,
            out_shape=out_shape,
            grid_spec=pltpu.PrefetchScalarGridSpec(
                num_scalar_prefetch=1,                          # flat ids -> SMEM
                grid=(nb,),
                in_specs=[pl.BlockSpec((V, D), lambda i, ids: (0, 0))],
                out_specs=pl.BlockSpec((tm, D), lambda i, ids: (i, 0)),
            ),
            compiler_params=pltpu.CompilerParams(
                dimension_semantics=("parallel",),
                vmem_limit_bytes=32 * 1024 * 1024),
        )(ids_flat, weight)
    else:
        # ---- Path B: HBM table, manual per-row DMA gather ------------------
        if apply_dropout:
            kernel = functools.partial(_hbm_gather_train_kernel, tm=tm,
                                       dropout_p=float(dropout_p),
                                       seed=int(seed))
            scratch = [pltpu.VMEM((2, tm, D), weight.dtype),    # double buffer
                       pltpu.SemaphoreType.DMA((2,))]
            # Cross-step double buffer carries state -> keep the axis sequential.
            semantics = ("arbitrary",)
        else:
            kernel = functools.partial(_hbm_gather_eval_kernel, tm=tm)
            scratch = [pltpu.SemaphoreType.DMA((1,))]
            semantics = ("parallel",)
        out = pl.pallas_call(
            kernel,
            out_shape=out_shape,
            grid_spec=pltpu.PrefetchScalarGridSpec(
                num_scalar_prefetch=1,                          # flat ids -> SMEM
                grid=(nb,),
                in_specs=[pl.BlockSpec(memory_space=pl.ANY)],   # table stays in HBM
                out_specs=pl.BlockSpec((tm, D), lambda i, ids: (i, 0)),
                scratch_shapes=scratch,
            ),
            compiler_params=pltpu.CompilerParams(dimension_semantics=semantics),
        )(ids_flat, weight)

    return {"out": out[:N].reshape(B, S, D)}


def make_embedding_weight(vocab_size, embedding_dims, padding_idx=0, key=None):
    """Init mirroring nn.Embedding (N(0,1)) with the padding row zeroed."""
    if key is None:
        key = jax.random.PRNGKey(0)
    w = jax.random.normal(key, (vocab_size, embedding_dims), dtype=jnp.float32)
    w = w.at[padding_idx].set(0.0)
    return w


if __name__ == "__main__":
    vocab_size = 64
    embedding_dims = 128
    B, S = 2, 8
    padding_idx = 0

    root = jax.random.PRNGKey(0)
    k_w, k_ids = jax.random.split(root)

    weight = make_embedding_weight(vocab_size, embedding_dims, padding_idx, k_w)
    ids = jax.random.randint(k_ids, (B, S), 0, vocab_size, dtype=jnp.int32)
    ids = ids.at[0, 0].set(padding_idx)     # ensure padding_idx appears

    ref = jnp.take(weight, ids, axis=0)

    def check_eval(out):
        out = jax.block_until_ready(out)
        assert out.shape == (B, S, embedding_dims)
        assert jnp.allclose(out, ref, atol=1e-5, rtol=1e-5), "eval mismatch"
        assert jnp.all(out[0, 0] == 0.0), "padding_idx row must be zero"

    def check_train(out):
        out = jax.block_until_ready(out)
        assert out.shape == (B, S, embedding_dims)
        # Inverted dropout p=0.5: every element is 0 or exactly 2x the embedding.
        ok = jnp.logical_or(jnp.isclose(out, 0.0, atol=1e-6),
                            jnp.isclose(out, 2.0 * ref, atol=1e-4, rtol=1e-4))
        assert bool(jnp.all(ok)), "dropout semantics mismatch"
        nz = jnp.abs(ref) > 1e-6
        drop = (jnp.sum(jnp.where(nz, jnp.abs(out) <= 1e-6, False))
                / jnp.maximum(jnp.sum(nz), 1))
        assert 0.3 < float(drop) < 0.7, "dropout rate far from p=0.5"

    # Exercise all three gather paths on the same inputs.
    variants = {
        "onehot": {},                               # resident table + one-hot MXU
        "rowslice": dict(onehot_vocab_limit=0),     # resident table + row gather
        "hbm": dict(force_hbm_gather=True),         # HBM DMA gather
    }
    train_outs = {}
    for name, kw in variants.items():
        out_eval = embedding_forward(
            {"inputs": ids, "training": False}, weight, **kw)["out"]
        check_eval(out_eval)
        out_train = embedding_forward(
            {"inputs": ids, "training": True}, weight,
            dropout_p=0.5, seed=123, **kw)["out"]
        check_train(out_train)
        train_outs[name] = out_train

    # The hash-based mask depends only on (token, dim, seed): all paths agree.
    assert jnp.allclose(train_outs["rowslice"], train_outs["hbm"],
                        atol=1e-5, rtol=1e-5), "mask mismatch rowslice vs hbm"
    assert jnp.allclose(train_outs["onehot"], train_outs["hbm"],
                        atol=1e-4, rtol=1e-4), "mask mismatch onehot vs hbm"

    print("KERNEL_OK")
</pallas_src>

<mosaic_0001>
module attributes {stable_mosaic.version = 11 : i64} {
  func.func @_onehot_gather_kernel(%arg0: i32, %arg1: memref<16x1xi32, #tpu.memory_space<vmem>>, %arg2: memref<64x128xf32, #tpu.memory_space<vmem>>, %arg3: memref<16x128xf32, #tpu.memory_space<vmem>>) attributes {dimension_semantics = [#tpu.dimension_semantics<parallel>], iteration_bounds = array<i64: 1>, scalar_prefetch = 0 : i64, scratch_operands = 0 : i64, tpu.core_type = #tpu.core_type<tc>, window_params = [{transform_indices = @transform_0, window_bounds = array<i64: 16, 1>}, {pipeline_mode = #tpu.pipeline_mode<synchronous>, transform_indices = @transform_1, window_bounds = array<i64: 64, 128>}, {transform_indices = @transform_2, window_bounds = array<i64: 16, 128>}]} {
    %c0 = arith.constant 0 : index
    %c0_0 = arith.constant 0 : index
    %0 = vector.load %arg1[%c0, %c0_0] : memref<16x1xi32, #tpu.memory_space<vmem>>, vector<16x1xi32>
    %1 = tpu.iota {dimensions = array<i32: 1>} : vector<16x64xi32>
    %2 = vector.broadcast %0 : vector<16x1xi32> to vector<16x64xi32>
    %3 = arith.cmpi eq, %2, %1 : vector<16x64xi32>
    %4 = arith.extui %3 : vector<16x64xi1> to vector<16x64xi32>
    %5 = arith.sitofp %4 : vector<16x64xi32> to vector<16x64xf32>
    %c0_1 = arith.constant 0 : index
    %c0_2 = arith.constant 0 : index
    %6 = vector.load %arg2[%c0_1, %c0_2] : memref<64x128xf32, #tpu.memory_space<vmem>>, vector<64x128xf32>
    %cst = arith.constant dense<0.000000e+00> : vector<16x128xf32>
    %7 = tpu.matmul %5, %6, %cst {dimension_numbers = #tpu.dot_dimension_numbers<[1], [0], [0], [1], [0, 0, 1, 1], [], []>, precision = #tpu.contract_precision<fp32>} : vector<16x64xf32>, vector<64x128xf32>, vector<16x128xf32> -> vector<16x128xf32>
    %c0_3 = arith.constant 0 : index
    %c0_4 = arith.constant 0 : index
    %8 = vector.load %arg3[%c0_3, %c0_4] : memref<16x128xf32, #tpu.memory_space<vmem>>, vector<16x128xf32>
    tpu.vector_store %arg3[%c0_3, %c0_4], %7 {strides = array<i32>} : memref<16x128xf32, #tpu.memory_space<vmem>>, vector<16x128xf32>,
    return
  }
  func.func @transform_0(%arg0: i32) -> (i32, i32) {
    %c0_i32 = arith.constant 0 : i32
    %c0_i32_0 = arith.constant 0 : i32
    return %arg0, %c0_i32 : i32, i32
  }
  func.func @transform_1(%arg0: i32) -> (i32, i32) {
    %c0_i32 = arith.constant 0 : i32
    %c0_i32_0 = arith.constant 0 : i32
    %c0_i32_1 = arith.constant 0 : i32
    return %c0_i32, %c0_i32_0 : i32, i32
  }
  func.func @transform_2(%arg0: i32) -> (i32, i32) {
    %c0_i32 = arith.constant 0 : i32
    %c0_i32_0 = arith.constant 0 : i32
    return %arg0, %c0_i32 : i32, i32
  }
}

</mosaic_0001>

<bundles_post_ra>
// kernel: tpu_custom_call.1
= control target key start
LH: loop header
LB: loop body
LE: loop exit
PB: predicated region body
PF: predicated region fallthrough
CT: control target
= control target key end

     0   :  { %7 = vsyncpa [#allocation3], 0  ;;  %s1100_s0 = inlined_call_operand.vmem [shape: s32[16,1], index: 0, kind: input, shape index: {}]   ;;  %s1101_s1 = inlined_call_operand.hbm [shape: f32[64,128], index: 1, kind: input, shape index: {}]   ;;  %s1102_s2 = inlined_call_operand.hbm [shape: f32[16,128], index: 2, kind: output, shape index: {}]  }
   0x1   :  { %8 = vsyncpa [#allocation4], 0  ;;  %s999_s9 = smov [#allocation2]   ;;  %s951_s13 = scalar_lea.hbm %s1101_s1, 1024 }
   0x2   :  { %s16_s10 = sshll.u32 %s999_s9, 4  ;;  %p952_p0 = scmp.ne.s32.totalorder %s1101_s1, %s951_s13  ;;  %s17_s10 = int_to_ptr.vmem [resolvable:$true] %s16_s10 }
   0x3   :  { %p955_p1 = scmp.lt.u32.totalorder %s951_s13, %s1101_s1 }
   0x5   :  { %p957_p2 = pnand %p955_p1, %p952_p0 }
   0x7   :  { %960 = shalt.err (!%p957_p2)
}
   0x8   :  { %s961_s18 = scalar_lea.vmem %s17_s10, 1024  ;;  %p966_p4 = scmp.lt.s32.totalorder %s17_s10, %s17_s10 }
   0x9   :  { %p962_p3 = scmp.ne.s32.totalorder %s17_s10, %s961_s18  ;;  %p967_p5 = scmp.lt.s32.totalorder %s961_s18, %s961_s18 }
   0xb   :  { %p968_p6 = por %p967_p5, %p966_p4 }
   0xd   :  { %p969_p7 = pnand %p968_p6, %p962_p3 }
   0xf   :  { %972 = shalt.err (!%p969_p7)
}
  0x10   :  { %s1000_s19 = smov 128   ;;  %s1001_s20 = smov 8  }
  0x11   :  { %22 = dma.hbm_to_vmem [thread:$0]  %s1101_s1, 1024, %s17_s10, [#allocation3], %s1000_s19, %s1000_s19, %s1001_s20  }
  0x12   :  { %995 = dma.done.wait [#allocation3], 1024  }
  0x13   :  { %996 = vsyncadd [#allocation3], 4294966272  ;;  %v1002_v0 = vmov 0   ;;  %v26_v1 = vld [vmem:[%s1100_s0] sm:$0xff]  ;;  %v43_v3 = vld [vmem:[#allocation2 + $0x8] sm:$0xff]  ;;  %vm50_vm0 = vcmask 523264  }
  0x14   :  { %950 = vset.pattern.permute.xlu0 %v1002_v0  ;;  %v42_v2 = vld [vmem:[#allocation2] sm:$0xff]  ;;  %v44_v5 = vld [vmem:[#allocation2 + $0x10] sm:$0xff]  ;;  %v45_v6 = vld [vmem:[#allocation2 + $0x18] sm:$0xff]  ;;  %v61_v8 = vand.u32 4294901760, %v43_v3 }
  0x15   :  { %31 = vperm.xlu0 %950, %v26_v1   ;;  %v58_v4 = vand.u32 4294901760, %v42_v2  ;;  %v27_v7 = vld [vmem:[%s1100_s0 + $0x8] sm:$0xff]  ;;  %v64_v9 = vand.u32 4294901760, %v44_v5  ;;  %v67_v10 = vand.u32 4294901760, %v45_v6  ;;  %v46_v11 = vld [vmem:[#allocation2 + $0x20] sm:$0xff]  ;;  %v48_v17 = vld [vmem:[#allocation2 + $0x30] sm:$0xff] }
  0x16   :  { %v47_v12 = vld [vmem:[#allocation2 + $0x28] sm:$0xff]  ;;  %v70_v15 = vand.u32 4294901760, %v46_v11  ;;  %v49_v18 = vld [vmem:[#allocation2 + $0x38] sm:$0xff]  ;;  %v159_v20 = vsub.f32 %v43_v3, %v61_v8  ;;  %v76_v21 = vand.u32 4294901760, %v48_v17  ;;  %v28_v3 = vlaneseq  ;;  %s1004_s0 = smov [#allocation5]  }
  0x17   :  { %v1041_v13 = vpack.c.bf16 %v61_v8, %v58_v4  ;;  %v1043_v14 = vpack.c.bf16 %v67_v10, %v64_v9  ;;  %v73_v16 = vand.u32 4294901760, %v47_v12  ;;  %v152_v19 = vsub.f32 %v42_v2, %v58_v4  ;;  %s644_s1 = sshll.u32 %s1004_s0, 4  ;;  %s645_s1 = int_to_ptr.vmem [resolvable:$true] %s644_s1 }
  0x18   :  { %v79_v22 = vand.u32 4294901760, %v49_v18  ;;  %v160_v24 = vand.u32 4294901760, %v159_v20  ;;  %v166_v28 = vsub.f32 %v44_v5, %v64_v9  ;;  %v173_v29 = vsub.f32 %v45_v6, %v67_v10  ;;  %s973_s27 = scalar_lea.vmem %s645_s1, 256  ;;  %p978_p9 = scmp.lt.s32.totalorder %s645_s1, %s645_s1 }
  0x19   :  { %34 = vperm.xlu0 %950, %v27_v7   ;;  %887 = vmatprep.subr.bf16.mxu0 %v1041_v13  ;;  %v153_v23 = vand.u32 4294901760, %v152_v19  ;;  %v1051_v25 = vpack.c.bf16 %v73_v16, %v70_v15  ;;  %v180_v38 = vsub.f32 %v46_v11, %v70_v15  ;;  %v187_v39 = vsub.f32 %v47_v12, %v73_v16  ;;  %p974_p8 = scmp.ne.s32.totalorder %s645_s1, %s973_s27  ;;  %p979_p10 = scmp.lt.s32.totalorder %s973_s27, %s973_s27 }
  0x1a   :  { %839 = vmatprep.subr.bf16.mxu1 %v1041_v13  ;;  %889 = vmatpush3.bf16.msra.mxu0 %v1041_v13  ;;  %v161_v27 = vsub.f32 %v159_v20, %v160_v24  ;;  %v1055_v30 = vpack.c.bf16 %v79_v22, %v76_v21  ;;  %v167_v33 = vand.u32 4294901760, %v166_v28  ;;  %v174_v34 = vand.u32 4294901760, %v173_v29 }
  0x1b   :  { %841 = vmatpush3.bf16.msra.mxu1 %v1041_v13  ;;  %891 = vmatprep.subr.bf16.mxu0 %v1043_v14  ;;  %v154_v26 = vsub.f32 %v152_v19, %v153_v23  ;;  %v902_v40 = vpack.c.bf16 %v160_v24, %v153_v23  ;;  %v181_v44 = vand.u32 4294901760, %v180_v38  ;;  %v188_v45 = vand.u32 4294901760, %v187_v39  ;;  %p980_p11 = por %p979_p10, %p978_p9 }
  0x1c   :  { %843 = vmatprep.subr.bf16.mxu1 %v1043_v14  ;;  %v162_v32 = vand.u32 4294901760, %v161_v27  ;;  %v1059_v35 = vpack.c.bf16 %v174_v34, %v167_v33  ;;  %v168_v36 = vsub.f32 %v166_v28, %v167_v33  ;;  %v175_v37 = vsub.f32 %v173_v29, %v174_v34 }
  0x1d   :  { %v155_v31 = vand.u32 4294901760, %v154_v26  ;;  %v194_v47 = vsub.f32 %v48_v17, %v76_v21  ;;  %v201_v48 = vsub.f32 %v49_v18, %v79_v22  ;;  %v910_v49 = vpack.c.bf16 %v188_v45, %v181_v44  ;;  %p981_p12 = pnand %p980_p11, %p974_p8 }
  0x1e   :  { %893 = vmatpush3.bf16.msra.mxu0 %v1043_v14  ;;  %v169_v42 = vand.u32 4294901760, %v168_v36  ;;  %v176_v43 = vand.u32 4294901760, %v175_v37  ;;  %v182_v50 = vsub.f32 %v180_v38, %v181_v44  ;;  %v189_v51 = vsub.f32 %v187_v39, %v188_v45 }
  0x1f   :  { %845 = vmatpush3.bf16.msra.mxu1 %v1043_v14  ;;  %895 = vmatprep.subr.bf16.mxu0 %v1051_v25  ;;  %v854_v41 = vpack.c.bf16 %v162_v32, %v155_v31  ;;  %v195_v52 = vand.u32 4294901760, %v194_v47  ;;  %v202_v53 = vand.u32 4294901760, %v201_v48  ;;  %v870_v63 = vpack.c.bf16 %v159_v20, %v152_v19 }
  0x20   :  { %847 = vmatprep.subr.bf16.mxu1 %v1051_v25  ;;  %v858_v46 = vpack.c.bf16 %v176_v43, %v169_v42  ;;  %v183_v54 = vand.u32 4294901760, %v182_v50  ;;  %v190_v55 = vand.u32 4294901760, %v189_v51  ;;  %v874_v0 = vpack.c.bf16 %v173_v29, %v166_v28 }
  0x21   :  { %v914_v56 = vpack.c.bf16 %v202_v53, %v195_v52  ;;  %v196_v57 = vsub.f32 %v194_v47, %v195_v52  ;;  %v203_v58 = vsub.f32 %v201_v48, %v202_v53  ;;  %v878_v1 = vpack.c.bf16 %v187_v39, %v180_v38 }
  0x22   :  { %897 = vmatpush3.bf16.msra.mxu0 %v1051_v25  ;;  %v862_v59 = vpack.c.bf16 %v190_v55, %v183_v54  ;;  %v882_v2 = vpack.c.bf16 %v201_v48, %v194_v47  ;;  %v29_v4 = vand.u32 127, %v28_v3  ;;  %v1003_v6 = vmov 0.0  }
  0x23   :  { %849 = vmatpush3.bf16.msra.mxu1 %v1051_v25  ;;  %899 = vmatprep.subr.bf16.mxu0 %v1055_v30  ;;  %v197_v60 = vand.u32 4294901760, %v196_v57  ;;  %v204_v61 = vand.u32 4294901760, %v203_v58 }
  0x24   :  { %851 = vmatprep.subr.bf16.mxu1 %v1055_v30 }
  0x25   :  { %v866_v62 = vpack.c.bf16 %v204_v61, %v197_v60 }
  0x26   :  { %901 = vmatpush3.bf16.msra.mxu0 %v1055_v30 }
  0x27   :  { %853 = vmatpush3.bf16.msra.mxu1 %v1055_v30  ;;  %903 = vmatprep.subr.bf16.mxu0 %v902_v40 }
  0x28   :  { %855 = vmatprep.subr.bf16.mxu1 %v854_v41 }
  0x94   :  { %v32_v5 = vpop.permute.xlu0 %31 }
  0x95   :  { %vm36_vm1 = vcmp.eq.s32.totalorder %v32_v5, %v29_v4 }
  0x96   :  { %v656_v7 = vsel %vm36_vm1, 1.0, %v1003_v6 }
  0x97   :  { %v52_v8 = vsel %vm50_vm0, %v656_v7, 0 }
  0x98   :  { %v131_v9 = vsub.f32 %v52_v8, %v52_v8  ;;  %v35_v10 = vpop.permute.xlu0 %34 }
  0x99   :  { %vm37_vm2 = vcmp.eq.s32.totalorder %v35_v10, %v29_v4 }
  0x9a   :  { %v657_v11 = vsel %vm37_vm2, 1.0, %v1003_v6  ;;  %v132_v12 = vand.u32 4294901760, %v131_v9 }
  0x9b   :  { %v55_v15 = vsel %vm50_vm0, %v657_v11, 0 }
  0x9c   :  { %v141_v16 = vsub.f32 %v55_v15, %v55_v15  ;;  %797 = vmatprep.mubr.f32.mxu0 %v132_v12  ;;  %v133_v17 = vsub.f32 %v131_v9, %v132_v12 }
  0x9e   :  { %v134_v18 = vand.u32 4294901760, %v133_v17  ;;  %v142_v19 = vand.u32 4294901760, %v141_v16 }
  0xa0   :  { %740 = vmatprep.mubr.f32.mxu1 %v134_v18  ;;  %798 = vmatmul.mubr.f32.vlgmr.msra.gmra.mrb[0].mxu0 %v142_v19  ;;  %v143_v20 = vsub.f32 %v141_v16, %v142_v19 }
  0xa1   :  { %905 = vmatpush3.bf16.msra.mxu0 %v902_v40  ;;  %816 = vmatprep.mubr.msk.f32.mxu0 %vm50_vm0, %v656_v7 }
  0xa2   :  { %907 = vmatprep.subr.bf16.mxu0 %v1059_v35  ;;  %v144_v21 = vand.u32 4294901760, %v143_v20 }
  0xa4   :  { %741 = vmatmul.mubr.f32.vlgmr.msra.gmra.mrb[0].mxu1 %v144_v21 }
  0xa5   :  { %857 = vmatpush3.bf16.msra.mxu1 %v854_v41  ;;  %909 = vmatpush3.bf16.msra.mxu0 %v1059_v35 }
  0xa6   :  { %759 = vmatprep.mubr.msk.f32.mxu1 %vm50_vm0, %v656_v7  ;;  %859 = vmatprep.subr.bf16.mxu1 %v858_v46 }
  0xa7   :  { %911 = vmatprep.subr.bf16.mxu0 %v910_v49 }
  0xa9   :  { %861 = vmatpush3.bf16.msra.mxu1 %v858_v46  ;;  %913 = vmatpush3.bf16.msra.mxu0 %v910_v49 }
  0xaa   :  { %863 = vmatprep.subr.bf16.mxu1 %v862_v59  ;;  %915 = vmatprep.subr.bf16.mxu0 %v914_v56 }
  0xad   :  { %865 = vmatpush3.bf16.msra.mxu1 %v862_v59  ;;  %917 = vmatpush3.bf16.msra.mxu0 %v914_v56 }
  0xae   :  { %867 = vmatprep.subr.bf16.mxu1 %v866_v62  ;;  %919 = vmatprep.subr.bf16.mxu0 %v1041_v13 }
  0xb0   :  { %817 = vmatmul.mubr.msk.f32.vlgmr.msra.gmra.mrb[0].mxu0 %vm50_vm0, %v657_v11 }
  0xb1   :  { %869 = vmatpush3.bf16.msra.mxu1 %v866_v62  ;;  %921 = vmatpush3.bf16.msra.mxu0 %v1041_v13 }
  0xb2   :  { %835 = vmatprep.mubr.msk.f32.mxu0 %vm50_vm0, %v656_v7  ;;  %871 = vmatprep.subr.bf16.mxu1 %v870_v63 }
  0xb3   :  { %923 = vmatprep.subr.bf16.mxu0 %v1043_v14 }
  0xb4   :  { %760 = vmatmul.mubr.msk.f32.vlgmr.msra.gmra.mrb[0].mxu1 %vm50_vm0, %v657_v11 }
  0xb5   :  { %873 = vmatpush3.bf16.msra.mxu1 %v870_v63  ;;  %778 = vmatprep.mubr.f32.mxu1 %v131_v9 }
  0xb6   :  { %925 = vmatpush3.bf16.msra.mxu0 %v1043_v14  ;;  %875 = vmatprep.subr.bf16.mxu1 %v874_v0 }
  0xb7   :  { %927 = vmatprep.subr.bf16.mxu0 %v1051_v25 }
  0xb9   :  { %877 = vmatpush3.bf16.msra.mxu1 %v874_v0 }
  0xba   :  { %929 = vmatpush3.bf16.msra.mxu0 %v1051_v25  ;;  %879 = vmatprep.subr.bf16.mxu1 %v878_v1 }
  0xbb   :  { %931 = vmatprep.subr.bf16.mxu0 %v1055_v30 }
  0xbd   :  { %881 = vmatpush3.bf16.msra.mxu1 %v878_v1 }
  0xbe   :  { %933 = vmatpush3.bf16.msra.mxu0 %v1055_v30  ;;  %883 = vmatprep.subr.bf16.mxu1 %v882_v2 }
  0xc1   :  { %836 = vmatmul.mubr.msk.f32.vlgmr.msra.gmra.mrb[0].mxu0 %vm50_vm0, %v657_v11  ;;  %885 = vmatpush3.bf16.msra.mxu1 %v882_v2 }
  0xc4   :  { %779 = vmatmul.mubr.f32.vlgmr.msra.gmra.mrb[0].mxu1 %v141_v16 }
 0x194   :  { %v837_v13 = vpop.f32.mrb[0].mxu0 }
 0x195   :  { %v627_v22 = vpop.f32.mrb[1].mxu0 }
 0x197   :  { %v780_v14 = vpop.f32.mrb[0].mxu1 }
 0x198   :  { %v934_v23 = vadd.f32 %v837_v13, %v780_v14  ;;  %v351_v24 = vpop.f32.mrb[1].mxu1 }
 0x199   :  { %v935_v26 = vadd.f32 %v627_v22, %v351_v24 }
 0x19a   :  { %638 = vst [vmem:[#allocation5 + $0x8] sm:$0xff] %v934_v23 }
 0x19b   :  { %637 = vst [vmem:[#allocation5] sm:$0xff] %v935_v26 }
 0x19c   :  { %984 = shalt.err (!%p981_p12)
}
 0x19d   :  { %s985_s30 = scalar_lea.hbm %s1102_s2, 256 }
 0x19e   :  { %p986_p13 = scmp.ne.s32.totalorder %s1102_s2, %s985_s30  ;;  %p989_p0 = scmp.lt.u32.totalorder %s985_s30, %s1102_s2 }
 0x1a0   :  { %p991_p1 = pnand %p989_p0, %p986_p13 }
 0x1a2   :  { %994 = shalt.err (!%p991_p1)
}
 0x1a3   :  { %650 = dma.vmem_to_hbm [thread:$0]  %s645_s1, 256, %s1102_s2, [#allocation4], %s1000_s19, %s1000_s19, %s1001_s20  }
 0x1a4   :  { %997 = dma.done.wait [#allocation4], 256  }
 0x1a5   :  { %998 = vsyncadd [#allocation4], 4294967040 }
 0x1a6   :  { %654 = vsyncpa [#allocation3], 1 }
 0x1a7   :  { %655 = vsyncpa [#allocation4], 1 }

</bundles_post_ra>
